<compile_context>
chip_gen: v7x
topology: tpu7x:2x2x1
jax: 0.10.0
libtpu: 0.0.40
codegen_flags: <defaults>
</compile_context>

<pallas_src>
import jax
import jax.numpy as jnp
from jax.experimental import pallas as pl
from jax.experimental.pallas import tpu as pltpu

_BLOCK_ELEM_BUDGET = (4 * 1024 * 1024) // 4     # ~4 MiB of f32 per x block
_VMEM_LIMIT_BYTES = 32 * 1024 * 1024            # safe on v5e / v6e / v7x


def _pick_hw_tile(hw, c):
    """Lane tile: multiple of 128 within the byte budget; full HW if < 128."""
    if hw < 128:
        return hw                               # last dim == full array dim (legal)
    lanes_budget = max(128, (_BLOCK_ELEM_BUDGET // max(c, 1)) // 128 * 128)
    return max(128, min((hw // 128) * 128, lanes_budget))


def _pick_n_block(n, c, hw_tile, n_tiles):
    """Block several samples per grid step when one sample's slab is small."""
    if n_tiles != 1:
        return 1
    for d in range(n, 0, -1):
        if n % d == 0 and d * c * hw_tile <= _BLOCK_ELEM_BUDGET:
            return d
    return 1


def _make_stats_kernel(hw, hw_tile, needs_mask):
    use_mxu = (hw_tile % 128 == 0)

    def kernel(x_ref, psum_ref, psq_ref):
        t = pl.program_id(1)

        @pl.when(t == 0)
        def _init():
            psum_ref[...] = jnp.zeros_like(psum_ref)
            psq_ref[...] = jnp.zeros_like(psq_ref)

        x = x_ref[...].astype(jnp.float32)       # (n_blk, C, hw_tile)
        xs = jnp.sum(x, axis=0)                  # (C, hw_tile)  VPU
        x2s = jnp.sum(x * x, axis=0)             # (C, hw_tile)  VPU
        if needs_mask:                           # static: only when HW % hw_tile != 0
            lane = jax.lax.broadcasted_iota(jnp.int32, xs.shape, 1)
            valid = (t * hw_tile + lane) < hw
            xs = jnp.where(valid, xs, 0.0)
            x2s = jnp.where(valid, x2s, 0.0)
        if use_mxu:
            # Lane reduction on the idle MXU; accumulate into the resident
            # (C, 1) output blocks (reduction axis is last / "arbitrary").
            ones = jnp.ones((hw_tile, 1), jnp.float32)
            psum_ref[...] += jnp.dot(xs, ones, preferred_element_type=jnp.float32)
            psq_ref[...] += jnp.dot(x2s, ones, preferred_element_type=jnp.float32)
        else:
            # Tiny (HW < 128) tiles: one cheap XLU reduce per step.
            psum_ref[...] += jnp.sum(xs, axis=1, keepdims=True)
            psq_ref[...] += jnp.sum(x2s, axis=1, keepdims=True)

    return kernel


def _norm_kernel(scale_ref, shift_ref, x_ref, o_ref):
    """out = x * scale + shift (per-channel affine fully folded outside)."""
    s = scale_ref[...]                           # (C, 1) broadcasts over the block
    b = shift_ref[...]
    o_ref[...] = (x_ref[...].astype(s.dtype) * s + b).astype(o_ref.dtype)


def batchnorm2d_forward(x_nchw, weight, bias, running_mean, running_var,
                        eps=1e-5, momentum=0.1, training=True):
    """Returns (out_nchw, new_running_mean, new_running_var)."""
    N, C, H, W = x_nchw.shape
    HW = H * W
    M = N * HW
    itemsize = jnp.dtype(x_nchw.dtype).itemsize
    x3 = x_nchw.reshape(N, C, HW)                # contiguous view, no transpose

    hw_tile = _pick_hw_tile(HW, C)
    n_tiles = pl.cdiv(HW, hw_tile)
    n_blk = _pick_n_block(N, C, hw_tile, n_tiles)
    needs_mask = (HW % hw_tile) != 0
    grid = (N // n_blk, n_tiles)

    x_spec = pl.BlockSpec((n_blk, C, hw_tile), lambda nb, t: (nb, 0, t))
    stat_spec = pl.BlockSpec((None, C, 1), lambda nb, t: (nb, 0, 0))

    if training:
        psum, psq = pl.pallas_call(
            _make_stats_kernel(HW, hw_tile, needs_mask),
            out_shape=(jax.ShapeDtypeStruct((N // n_blk, C, 1), jnp.float32),
                       jax.ShapeDtypeStruct((N // n_blk, C, 1), jnp.float32)),
            grid_spec=pltpu.PrefetchScalarGridSpec(
                num_scalar_prefetch=0,
                grid=grid,
                in_specs=[x_spec],
                out_specs=(stat_spec, stat_spec)),
            compiler_params=pltpu.CompilerParams(
                dimension_semantics=("parallel", "arbitrary"),
                vmem_limit_bytes=_VMEM_LIMIT_BYTES),
            cost_estimate=pl.CostEstimate(
                flops=3 * N * C * HW, transcendentals=0,
                bytes_accessed=N * C * HW * itemsize + 2 * (N // n_blk) * C * 4),
        )(x3)

        total_sum = jnp.sum(psum[:, :, 0], axis=0)      # (C,)
        total_sq = jnp.sum(psq[:, :, 0], axis=0)        # (C,)
        mean = total_sum / M
        # Biased variance (unbiased=False).  NOTE: this module (the spec)
        # also feeds the *biased* batch variance into running_var, unlike
        # stock nn.BatchNorm2d which would use var * M/(M-1) for the buffer.
        # TODO(synk): for extreme M / tiny variance a centered second pass
        # would avoid E[x^2] - mean^2 cancellation; clamped at 0 here.
        var = jnp.maximum(total_sq / M - mean * mean, 0.0)
        new_rm = (1.0 - momentum) * running_mean + momentum * mean
        new_rv = (1.0 - momentum) * running_var + momentum * var
    else:
        mean = running_mean.astype(jnp.float32)
        var = running_var.astype(jnp.float32)
        new_rm, new_rv = running_mean, running_var

    inv_std = jax.lax.rsqrt(var + eps)
    w32 = weight.astype(jnp.float32)
    scale32 = w32 * inv_std
    shift32 = bias.astype(jnp.float32) - mean * scale32
    # bf16 inputs: fold scale/shift to bf16 once so the in-kernel FMA stays
    # bf16 (halves vreg pressure on v6e/v7x); everything else computes in f32.
    pdtype = jnp.bfloat16 if x_nchw.dtype == jnp.bfloat16 else jnp.float32
    scale = scale32.astype(pdtype).reshape(C, 1)
    shift = shift32.astype(pdtype).reshape(C, 1)

    param_spec = pl.BlockSpec((C, 1), lambda nb, t: (0, 0))
    out3 = pl.pallas_call(
        _norm_kernel,
        out_shape=jax.ShapeDtypeStruct((N, C, HW), x_nchw.dtype),
        grid_spec=pltpu.PrefetchScalarGridSpec(
            num_scalar_prefetch=0,
            grid=grid,
            in_specs=[param_spec, param_spec, x_spec],
            out_specs=pl.BlockSpec((n_blk, C, hw_tile), lambda nb, t: (nb, 0, t))),
        compiler_params=pltpu.CompilerParams(
            dimension_semantics=("parallel", "parallel"),
            vmem_limit_bytes=_VMEM_LIMIT_BYTES),
        cost_estimate=pl.CostEstimate(
            flops=2 * N * C * HW, transcendentals=0,
            bytes_accessed=2 * N * C * HW * itemsize + 2 * C * 4),
    )(scale, shift, x3)

    # TODO(synk): v7x dual-TensorCore split of the HW-tile axis for N == 1
    # (second "parallel" grid axis with per-half partial sums) not implemented.
    return out3.reshape(N, C, H, W), new_rm, new_rv


def _reference_train(x, weight, bias, eps):
    mean = jnp.mean(x, axis=(0, 2, 3))
    var = jnp.var(x, axis=(0, 2, 3))    # biased, matches unbiased=False
    inv = jax.lax.rsqrt(var[None, :, None, None] + eps)
    xn = (x - mean[None, :, None, None]) * inv
    return weight[None, :, None, None] * xn + bias[None, :, None, None], mean, var


def _reference_eval(x, weight, bias, rm, rv, eps):
    inv = jax.lax.rsqrt(rv[None, :, None, None] + eps)
    xn = (x - rm[None, :, None, None]) * inv
    return weight[None, :, None, None] * xn + bias[None, :, None, None]


if __name__ == "__main__":
    eps, momentum = 1e-5, 0.1
    key = jax.random.PRNGKey(0)
    # (2,4,16,16): lane-aligned HW (256), multi-sample blocking.
    # (2,8,12,12): HW=144 -> 128-lane tiles + masked ragged tail tile.
    # (4,8, 7, 7): HW=49 < 128 -> full-HW lanes, 4 samples per block.
    configs = [(2, 4, 16, 16), (2, 8, 12, 12), (4, 8, 7, 7)]
    for (N, C, H, W) in configs:
        key, kx, kw, kb, km, kv = jax.random.split(key, 6)
        x = jax.random.normal(kx, (N, C, H, W), dtype=jnp.float32)
        weight = 1.0 + 0.1 * jax.random.normal(kw, (C,), jnp.float32)
        bias = 0.1 * jax.random.normal(kb, (C,), jnp.float32)
        running_mean = 0.05 * jax.random.normal(km, (C,), jnp.float32)
        running_var = 1.0 + 0.1 * jax.random.uniform(kv, (C,), jnp.float32)

        # --- training mode ---
        out, new_rm, new_rv = batchnorm2d_forward(
            x, weight, bias, running_mean, running_var,
            eps=eps, momentum=momentum, training=True)
        out = jax.block_until_ready(out)
        new_rm = jax.block_until_ready(new_rm)
        new_rv = jax.block_until_ready(new_rv)

        ref_out, ref_mean, ref_var = _reference_train(x, weight, bias, eps)
        ref_rm = (1.0 - momentum) * running_mean + momentum * ref_mean
        ref_rv = (1.0 - momentum) * running_var + momentum * ref_var

        assert out.shape == (N, C, H, W) and out.dtype == x.dtype
        assert jnp.allclose(out, ref_out, atol=1e-4, rtol=1e-4), (N, C, H, W)
        assert jnp.allclose(new_rm, ref_rm, atol=1e-5, rtol=1e-5), (N, C, H, W)
        assert jnp.allclose(new_rv, ref_rv, atol=1e-5, rtol=1e-5), (N, C, H, W)

        # --- eval mode (no stats pass, uses running statistics) ---
        out_e, rm_e, rv_e = batchnorm2d_forward(
            x, weight, bias, running_mean, running_var,
            eps=eps, momentum=momentum, training=False)
        out_e = jax.block_until_ready(out_e)
        ref_e = _reference_eval(x, weight, bias, running_mean, running_var, eps)
        assert jnp.allclose(out_e, ref_e, atol=1e-4, rtol=1e-4), (N, C, H, W)
        assert jnp.allclose(rm_e, running_mean) and jnp.allclose(rv_e, running_var)

    print("KERNEL_OK")
</pallas_src>

<mosaic_0001>
module attributes {stable_mosaic.version = 11 : i64} {
  func.func @kernel(%arg0: i32, %arg1: i32, %arg2: memref<2x4x256xf32, #tpu.memory_space<vmem>>, %arg3: memref<1x4x1xf32, #tpu.memory_space<vmem>>, %arg4: memref<1x4x1xf32, #tpu.memory_space<vmem>>) attributes {dimension_semantics = [#tpu.dimension_semantics<parallel>, #tpu.dimension_semantics<arbitrary>], iteration_bounds = array<i64: 1, 1>, scalar_prefetch = 0 : i64, scratch_operands = 0 : i64, tpu.core_type = #tpu.core_type<tc>, window_params = [{transform_indices = @transform_0, window_bounds = array<i64: 2, 4, 256>}, {transform_indices = @transform_1, window_bounds = array<i64: 1, 4, 1>}, {transform_indices = @transform_2, window_bounds = array<i64: 1, 4, 1>}]} {
    %c0_i32 = arith.constant 0 : i32
    %0 = arith.cmpi eq, %arg1, %c0_i32 : i32
    %1 = arith.extui %0 : i1 to i32
    %c0_i32_0 = arith.constant 0 : i32
    %2 = arith.cmpi ne, %1, %c0_i32_0 : i32
    scf.if %2 {
      %cst_19 = arith.constant 0.000000e+00 : f32
      %22 = vector.broadcast %cst_19 : f32 to vector<4x1xf32>
      %c0_20 = arith.constant 0 : index
      %c0_21 = arith.constant 0 : index
      %c0_22 = arith.constant 0 : index
      %23 = vector.load %arg3[%c0_20, %c0_21, %c0_22] : memref<1x4x1xf32, #tpu.memory_space<vmem>>, vector<1x4x1xf32>
      %24 = vector.shape_cast %23 : vector<1x4x1xf32> to vector<4x1xf32>
      %25 = vector.shape_cast %22 : vector<4x1xf32> to vector<1x4x1xf32>
      tpu.vector_store %arg3[%c0_20, %c0_21, %c0_22], %25 {strides = array<i32>} : memref<1x4x1xf32, #tpu.memory_space<vmem>>, vector<1x4x1xf32>,
      %cst_23 = arith.constant 0.000000e+00 : f32
      %26 = vector.broadcast %cst_23 : f32 to vector<4x1xf32>
      %c0_24 = arith.constant 0 : index
      %c0_25 = arith.constant 0 : index
      %c0_26 = arith.constant 0 : index
      %27 = vector.load %arg4[%c0_24, %c0_25, %c0_26] : memref<1x4x1xf32, #tpu.memory_space<vmem>>, vector<1x4x1xf32>
      %28 = vector.shape_cast %27 : vector<1x4x1xf32> to vector<4x1xf32>
      %29 = vector.shape_cast %26 : vector<4x1xf32> to vector<1x4x1xf32>
      tpu.vector_store %arg4[%c0_24, %c0_25, %c0_26], %29 {strides = array<i32>} : memref<1x4x1xf32, #tpu.memory_space<vmem>>, vector<1x4x1xf32>,
    } else {
    }
    %c0 = arith.constant 0 : index
    %c0_1 = arith.constant 0 : index
    %c0_2 = arith.constant 0 : index
    %3 = vector.load %arg2[%c0, %c0_1, %c0_2] : memref<2x4x256xf32, #tpu.memory_space<vmem>>, vector<2x4x256xf32>
    %cst = arith.constant dense<0.000000e+00> : vector<4x256xf32>
    %4 = vector.multi_reduction <add>, %3, %cst [0] : vector<2x4x256xf32> to vector<4x256xf32>
    %5 = arith.mulf %3, %3 : vector<2x4x256xf32>
    %cst_3 = arith.constant dense<0.000000e+00> : vector<4x256xf32>
    %6 = vector.multi_reduction <add>, %5, %cst_3 [0] : vector<2x4x256xf32> to vector<4x256xf32>
    %cst_4 = arith.constant 1.000000e+00 : f32
    %7 = vector.broadcast %cst_4 : f32 to vector<256x1xf32>
    %c0_5 = arith.constant 0 : index
    %c0_6 = arith.constant 0 : index
    %c0_7 = arith.constant 0 : index
    %8 = vector.load %arg3[%c0_5, %c0_6, %c0_7] : memref<1x4x1xf32, #tpu.memory_space<vmem>>, vector<1x4x1xf32>
    %9 = vector.shape_cast %8 : vector<1x4x1xf32> to vector<4x1xf32>
    %cst_8 = arith.constant dense<0.000000e+00> : vector<4x1xf32>
    %10 = tpu.matmul %4, %7, %cst_8 {dimension_numbers = #tpu.dot_dimension_numbers<[1], [0], [0], [1], [0, 0, 1, 1], [], []>} : vector<4x256xf32>, vector<256x1xf32>, vector<4x1xf32> -> vector<4x1xf32>
    %11 = arith.addf %9, %10 : vector<4x1xf32>
    %c0_9 = arith.constant 0 : index
    %c0_10 = arith.constant 0 : index
    %c0_11 = arith.constant 0 : index
    %12 = vector.load %arg3[%c0_9, %c0_10, %c0_11] : memref<1x4x1xf32, #tpu.memory_space<vmem>>, vector<1x4x1xf32>
    %13 = vector.shape_cast %12 : vector<1x4x1xf32> to vector<4x1xf32>
    %14 = vector.shape_cast %11 : vector<4x1xf32> to vector<1x4x1xf32>
    tpu.vector_store %arg3[%c0_9, %c0_10, %c0_11], %14 {strides = array<i32>} : memref<1x4x1xf32, #tpu.memory_space<vmem>>, vector<1x4x1xf32>,
    %c0_12 = arith.constant 0 : index
    %c0_13 = arith.constant 0 : index
    %c0_14 = arith.constant 0 : index
    %15 = vector.load %arg4[%c0_12, %c0_13, %c0_14] : memref<1x4x1xf32, #tpu.memory_space<vmem>>, vector<1x4x1xf32>
    %16 = vector.shape_cast %15 : vector<1x4x1xf32> to vector<4x1xf32>
    %cst_15 = arith.constant dense<0.000000e+00> : vector<4x1xf32>
    %17 = tpu.matmul %6, %7, %cst_15 {dimension_numbers = #tpu.dot_dimension_numbers<[1], [0], [0], [1], [0, 0, 1, 1], [], []>} : vector<4x256xf32>, vector<256x1xf32>, vector<4x1xf32> -> vector<4x1xf32>
    %18 = arith.addf %16, %17 : vector<4x1xf32>
    %c0_16 = arith.constant 0 : index
    %c0_17 = arith.constant 0 : index
    %c0_18 = arith.constant 0 : index
    %19 = vector.load %arg4[%c0_16, %c0_17, %c0_18] : memref<1x4x1xf32, #tpu.memory_space<vmem>>, vector<1x4x1xf32>
    %20 = vector.shape_cast %19 : vector<1x4x1xf32> to vector<4x1xf32>
    %21 = vector.shape_cast %18 : vector<4x1xf32> to vector<1x4x1xf32>
    tpu.vector_store %arg4[%c0_16, %c0_17, %c0_18], %21 {strides = array<i32>} : memref<1x4x1xf32, #tpu.memory_space<vmem>>, vector<1x4x1xf32>,
    return
  }
  func.func @transform_0(%arg0: i32, %arg1: i32) -> (i32, i32, i32) {
    %c0_i32 = arith.constant 0 : i32
    %c0_i32_0 = arith.constant 0 : i32
    return %arg0, %c0_i32, %arg1 : i32, i32, i32
  }
  func.func @transform_1(%arg0: i32, %arg1: i32) -> (i32, i32, i32) {
    %c0_i32 = arith.constant 0 : i32
    %c0_i32_0 = arith.constant 0 : i32
    %c0_i32_1 = arith.constant 0 : i32
    return %arg0, %c0_i32, %c0_i32_0 : i32, i32, i32
  }
  func.func @transform_2(%arg0: i32, %arg1: i32) -> (i32, i32, i32) {
    %c0_i32 = arith.constant 0 : i32
    %c0_i32_0 = arith.constant 0 : i32
    %c0_i32_1 = arith.constant 0 : i32
    return %arg0, %c0_i32, %c0_i32_0 : i32, i32, i32
  }
}

</mosaic_0001>

<bundles_post_ra>
// kernel: tpu_custom_call.1
= control target key start
LH: loop header
LB: loop body
LE: loop exit
PB: predicated region body
PF: predicated region fallthrough
CT: control target
= control target key end

     0   :  { %8 = vsyncpa [#allocation3], 0  ;;  %s349_s9 = smov [#allocation2]   ;;  %s411_s0 = inlined_call_operand.hbm [shape: f32[2,4,256], index: 0, kind: input, shape index: {}]   ;;  %s412_s1 = inlined_call_operand.vmem [shape: f32[1,4,1], index: 1, kind: output, shape index: {0}]   ;;  %s413_s2 = inlined_call_operand.vmem [shape: f32[1,4,1], index: 2, kind: output, shape index: {1}]  }
   0x1   :  { %s14_s10 = sshll.u32 %s349_s9, 4  ;;  %s325_s13 = scalar_lea.hbm %s411_s0, 256  ;;  %s15_s10 = int_to_ptr.vmem [resolvable:$true] %s14_s10 }
   0x2   :  { %p326_p0 = scmp.ne.s32.totalorder %s411_s0, %s325_s13  ;;  %p329_p1 = scmp.lt.u32.totalorder %s325_s13, %s411_s0 }
   0x4   :  { %p331_p2 = pnand %p329_p1, %p326_p0 }
   0x6   :  { %334 = shalt.err (!%p331_p2)
}
   0x7   :  { %s335_s18 = scalar_lea.vmem %s15_s10, 256  ;;  %p340_p4 = scmp.lt.s32.totalorder %s15_s10, %s15_s10 }
   0x8   :  { %p336_p3 = scmp.ne.s32.totalorder %s15_s10, %s335_s18  ;;  %p341_p5 = scmp.lt.s32.totalorder %s335_s18, %s335_s18 }
   0xa   :  { %p342_p6 = por %p341_p5, %p340_p4 }
   0xc   :  { %p343_p7 = pnand %p342_p6, %p336_p3 }
   0xe   :  { %346 = shalt.err (!%p343_p7)
}
   0xf   :  { %s350_s19 = smov 128   ;;  %s351_s20 = smov 8  }
  0x10   :  { %20 = dma.hbm_to_vmem [thread:$0]  %s411_s0, 256, %s15_s10, [#allocation3], %s350_s19, %s350_s19, %s351_s20  }
  0x11   :  { %347 = dma.done.wait [#allocation3], 256  }
  0x12   :  { %348 = vsyncadd [#allocation3], 4294967040  ;;  %vm28_vm0 = vcmask 3072   ;;  %v352_v0 = vmov 1.0|1.0   ;;  %v353_v1 = vmov 0.0  }
  0x13   :  { %286 = vmatprep.subr.bf16.mxu0 %v352_v0  ;;  %302 = vmatprep.subr.bf16.mxu1 %v352_v0  ;;  %29 = vst.msk [vmem:[%s412_s1] sm:$0xf] %vm28_vm0, %v353_v1  ;;  %30 = vst.msk [vmem:[%s413_s2] sm:$0xf] %vm28_vm0, %v353_v1  ;;  %v31_v2 = vld [vmem:[#allocation2] sm:$0xff]  ;;  %v32_v3 = vld [vmem:[#allocation2 + $0x8] sm:$0xff] }
  0x14   :  { %287 = vmatpush3.bf16.msra.mxu0 %v352_v0  ;;  %303 = vmatpush3.bf16.msra.mxu1 %v352_v0  ;;  %vm39_vm1 = vcmask 1043456   ;;  %v35_v4 = vcombine.high %v31_v2, %v31_v2  ;;  %v36_v5 = vcombine.high %v32_v3, %v32_v3  ;;  %v46_v6 = vmul.f32 %v31_v2, %v31_v2 }
  0x15   :  { %288 = vmatprep.subr.bf16.mxu0 %v352_v0  ;;  %304 = vmatprep.subr.bf16.mxu1 %v352_v0  ;;  %v47_v7 = vmul.f32 %v32_v3, %v32_v3  ;;  %v40_v16 = vsel %vm39_vm1, %v31_v2, 0.0  ;;  %v41_v17 = vsel %vm39_vm1, %v32_v3, 0.0 }
  0x16   :  { %v43_v8 = vsel %vm39_vm1, %v35_v4, 0.0  ;;  %v44_v9 = vsel %vm39_vm1, %v36_v5, 0.0  ;;  %v50_v10 = vcombine.high %v46_v6, %v46_v6  ;;  %v54_v18 = vsel %vm39_vm1, %v46_v6, 0.0 }
  0x17   :  { %v51_v11 = vcombine.high %v47_v7, %v47_v7  ;;  %v45_v12 = vadd.f32 %v44_v9, %v43_v8  ;;  %v55_v19 = vsel %vm39_vm1, %v47_v7, 0.0  ;;  %v42_v20 = vadd.f32 %v41_v17, %v40_v16 }
  0x18   :  { %289 = vmatpush3.bf16.msra.mxu0 %v352_v0  ;;  %305 = vmatpush3.bf16.msra.mxu1 %v352_v0  ;;  %v57_v13 = vsel %vm39_vm1, %v50_v10, 0.0  ;;  %v56_v21 = vadd.f32 %v55_v19, %v54_v18 }
  0x19   :  { %290 = vmatprep.subr.bf16.mxu0 %v352_v0  ;;  %306 = vmatprep.subr.bf16.mxu1 %v352_v0  ;;  %v58_v14 = vsel %vm39_vm1, %v51_v11, 0.0 }
  0x1a   :  { %125 = vmatprep.mubr.f32.mxu0 %v45_v12  ;;  %v59_v15 = vadd.f32 %v58_v14, %v57_v13  ;;  %v60_v24 = vld [vmem:[%s412_s1] sm:$0xf] }
  0x1b   :  { %v134_v26 = vld [vmem:[%s413_s2] sm:$0xf] }
  0x1c   :  { %291 = vmatpush3.bf16.msra.mxu0 %v352_v0  ;;  %307 = vmatpush3.bf16.msra.mxu1 %v352_v0 }
  0x1d   :  { %292 = vmatprep.subr.bf16.mxu0 %v352_v0  ;;  %308 = vmatprep.subr.bf16.mxu1 %v352_v0 }
  0x1e   :  { %199 = vmatprep.mubr.f32.mxu1 %v59_v15 }
  0x20   :  { %293 = vmatpush3.bf16.msra.mxu0 %v352_v0  ;;  %309 = vmatpush3.bf16.msra.mxu1 %v352_v0 }
  0x21   :  { %294 = vmatprep.subr.bf16.mxu0 %v352_v0  ;;  %310 = vmatprep.subr.bf16.mxu1 %v352_v0 }
  0x24   :  { %295 = vmatpush3.bf16.msra.mxu0 %v352_v0  ;;  %311 = vmatpush3.bf16.msra.mxu1 %v352_v0 }
  0x25   :  { %296 = vmatprep.subr.bf16.mxu0 %v352_v0  ;;  %312 = vmatprep.subr.bf16.mxu1 %v352_v0 }
  0x28   :  { %297 = vmatpush3.bf16.msra.mxu0 %v352_v0  ;;  %313 = vmatpush3.bf16.msra.mxu1 %v352_v0 }
  0x29   :  { %298 = vmatprep.subr.bf16.mxu0 %v352_v0  ;;  %314 = vmatprep.subr.bf16.mxu1 %v352_v0 }
  0x2c   :  { %299 = vmatpush3.bf16.msra.mxu0 %v352_v0  ;;  %315 = vmatpush3.bf16.msra.mxu1 %v352_v0 }
  0x2d   :  { %300 = vmatprep.subr.bf16.mxu0 %v352_v0  ;;  %316 = vmatprep.subr.bf16.mxu1 %v352_v0 }
  0x30   :  { %301 = vmatpush3.bf16.msra.mxu0 %v352_v0  ;;  %317 = vmatpush3.bf16.msra.mxu1 %v352_v0 }
  0x33   :  { %126 = vmatmul.mubr.f32.vlgmr.msra.gmra.mrb[0].mxu0 %v42_v20  ;;  %200 = vmatmul.mubr.f32.vlgmr.msra.gmra.mrb[0].mxu1 %v56_v21 }
 0x106   :  { %v248_v22 = vpop.f32.mrb[0].mxu0  ;;  %v283_v23 = vpop.f32.mrb[0].mxu1 }
 0x107   :  { %v249_v25 = vpop.f32.mrb[1].mxu0  ;;  %v284_v27 = vpop.f32.mrb[1].mxu1 }
 0x108   :  { %v250_v28 = vadd.f32 %v249_v25, %v248_v22  ;;  %v285_v29 = vadd.f32 %v284_v27, %v283_v23 }
 0x10a   :  { %v131_v30 = vadd.f32 %v250_v28, %v60_v24  ;;  %v205_v31 = vadd.f32 %v285_v29, %v134_v26 }
 0x10c   :  { %133 = vst.msk [vmem:[%s412_s1] sm:$0xf] %vm28_vm0, %v131_v30  ;;  %206 = vst.msk [vmem:[%s413_s2] sm:$0xf] %vm28_vm0, %v205_v31 }
 0x10d   :  { %215 = vsyncpa [#allocation3], 1 }

</bundles_post_ra>
